<compile_context>
chip_gen: v6e
topology: v6e:2x2x1
jax: 0.10.0
libtpu: 0.0.40
codegen_flags: <defaults>
</compile_context>

<pallas_src>
import functools

import jax
import jax.numpy as jnp
from jax.experimental import pallas as pl
from jax.experimental.pallas import tpu as pltpu

BN_EPS = 1e-5        # nn.BatchNorm1d default
LANE = 128           # lane width / last-dim padding target
SUBLANE_BF16 = 16    # bf16 vreg is (16, 128): keep batch a multiple of 16


def _round_up(n, m):
    return ((n + m - 1) // m) * m


def icarl_kernel(x_ref, wm_ref, gb_ref, wfc_ref, out_ref, *, inv_b):
    """Fused backbone-matmul + BatchNorm1d(train) + ReLU + Linear(no bias).

    x_ref   : (Bp, Din_p)  f32   flattened input, zero-padded rows/cols
    wm_ref  : (Din_p, Fp)  bf16  backbone (stand-in) projection weight (padded)
    gb_ref  : (2, Fp)      f32   row 0 = BN gamma, row 1 = BN beta (0-padded)
    wfc_ref : (Fp, Cp)     bf16  fc weight pre-transposed to (F, n_class) layout
    out_ref : (Bp, Cp)     f32   padded logits
    inv_b   : static float, 1 / (real batch size)
    """
    # ---- backbone: feat = x @ Wm  (bf16 MXU, f32 accumulate) ----
    x_bf = x_ref[...].astype(jnp.bfloat16)
    feat = jnp.dot(x_bf, wm_ref[...],
                   preferred_element_type=jnp.float32)             # (Bp, Fp) f32

    # ---- BatchNorm1d, training-mode batch statistics (f32) ----
    # Zero-padded batch rows contribute 0 to both sums; divide by the real B.
    # var = E[feat^2] - mean^2: one reduction pair, no centered temporary.
    s1 = jnp.sum(feat, axis=0, keepdims=True)                      # (1, Fp)
    s2 = jnp.sum(feat * feat, axis=0, keepdims=True)               # (1, Fp)
    mean = s1 * inv_b
    var = s2 * inv_b - mean * mean                                 # biased (train)
    inv_std = jax.lax.rsqrt(var + BN_EPS)                          # (1, Fp)

    gb = gb_ref[...]                                               # (2, Fp)
    # Fold BN affine into a single scale/shift FMA per row:
    #   h = gamma * (feat - mean) * inv_std + beta = feat*scale + shift
    scale = gb[0:1, :] * inv_std                                   # (1, Fp)
    shift = gb[1:2, :] - mean * scale                              # (1, Fp)
    h = jnp.maximum(feat * scale + shift, 0.0)                     # ReLU, f32

    # ---- fc (no bias): logits = h @ Wfc_T, canonical (M,K)x(K,N) matmul ----
    out = jnp.dot(h.astype(jnp.bfloat16), wfc_ref[...],
                  preferred_element_type=jnp.float32)              # (Bp, Cp)
    out_ref[...] = out


def prepare_params(w_model, bn_gamma, bn_beta, w_fc):
    """One-time (init-time) parameter prep: pad to lane-dense shapes, cast MXU
    weights to bf16, pre-transpose the fc weight, pack gamma/beta."""
    din, f = w_model.shape
    n_class = w_fc.shape[0]
    din_p = _round_up(din, LANE)
    f_p = _round_up(f, LANE)
    c_p = _round_up(n_class, LANE)

    wm_p = jnp.zeros((din_p, f_p), dtype=jnp.bfloat16)
    wm_p = wm_p.at[:din, :f].set(w_model.astype(jnp.bfloat16))

    # gamma/beta padded with ZERO so padded feature columns stay exactly 0.
    gb_p = jnp.zeros((2, f_p), dtype=jnp.float32)
    gb_p = gb_p.at[0, :f].set(bn_gamma.astype(jnp.float32))
    gb_p = gb_p.at[1, :f].set(bn_beta.astype(jnp.float32))

    # Pre-transpose torch Linear weight (n_class, F) -> (Fp, Cp) once at init.
    wfc_p = jnp.zeros((f_p, c_p), dtype=jnp.bfloat16)
    wfc_p = wfc_p.at[:f, :n_class].set(w_fc.T.astype(jnp.bfloat16))

    meta = dict(din=din, din_p=din_p, f=f, f_p=f_p, n_class=n_class, c_p=c_p)
    return wm_p, gb_p, wfc_p, meta


def icarl_forward(x_nchw, wm_p, gb_p, wfc_p, meta):
    """x_nchw: (B, C, H, W) float32.

    Returns PADDED logits (Bp, Cp) float32; the valid region is
    [:B, :meta['n_class']] and padded class columns are exactly 0.  Consumers
    should slice/mask downstream (keeps this call free of an extra XLA op)."""
    B = x_nchw.shape[0]
    din, din_p = meta["din"], meta["din_p"]
    f_p, c_p = meta["f_p"], meta["c_p"]

    b_p = _round_up(B, SUBLANE_BF16)

    x_flat = x_nchw.reshape(B, -1)                                  # (B, Din) f32
    if din_p != din or b_p != B:
        x_flat = jnp.pad(x_flat, ((0, b_p - B), (0, din_p - din)))

    # Advisory cost hint so XLA schedules neighbouring ops around this call.
    flops = 2 * b_p * din_p * f_p + 2 * b_p * f_p * c_p + 10 * b_p * f_p
    bytes_accessed = (x_flat.size * 4 + wm_p.size * 2 + gb_p.size * 4
                      + wfc_p.size * 2 + b_p * c_p * 4)
    cost = pl.CostEstimate(flops=flops, transcendentals=f_p,
                           bytes_accessed=bytes_accessed)

    kernel = functools.partial(icarl_kernel, inv_b=1.0 / float(B))

    out_p = pl.pallas_call(
        kernel,
        out_shape=jax.ShapeDtypeStruct((b_p, c_p), jnp.float32),
        in_specs=[
            pl.BlockSpec(memory_space=pltpu.VMEM),   # x_flat (f32)
            pl.BlockSpec(memory_space=pltpu.VMEM),   # w_model padded (bf16)
            pl.BlockSpec(memory_space=pltpu.VMEM),   # gamma/beta packed (f32)
            pl.BlockSpec(memory_space=pltpu.VMEM),   # w_fc pre-transposed (bf16)
        ],
        out_specs=pl.BlockSpec(memory_space=pltpu.VMEM),
        compiler_params=pltpu.CompilerParams(
            # Tiny footprint (<1 MiB); explicit limit stays valid on v7x's
            # 64 MiB VMEM as well as v5e/v6e's 128 MiB.
            vmem_limit_bytes=32 * 1024 * 1024),
        cost_estimate=cost,
    )(x_flat, wm_p, gb_p, wfc_p)

    return out_p


if __name__ == "__main__":
    # Small shapes consistent with the module's forward:
    #   image input (B, C, H, W) -> backbone -> (B, feature_size) -> n_class.
    # B = 16 keeps the batch a multiple of 16 (fully packed bf16 MXU rows) and
    # Din = 4*16*16 = 1024 is already a multiple of 128 (no input padding op).
    B, C, H, W = 16, 4, 16, 16
    FEATURE_SIZE = 32
    N_CLASS = 16
    DIN = C * H * W

    key = jax.random.PRNGKey(0)
    kx, kwm, kfc = jax.random.split(key, 3)

    x = jax.random.normal(kx, (B, C, H, W), dtype=jnp.float32)

    # Deterministic parameter init (synthetic; no checkpoint load).
    w_model = (jax.random.normal(kwm, (DIN, FEATURE_SIZE), dtype=jnp.float32)
               * (1.0 / jnp.sqrt(DIN)))
    bn_gamma = jnp.ones((FEATURE_SIZE,), dtype=jnp.float32)         # BN weight init
    bn_beta = jnp.zeros((FEATURE_SIZE,), dtype=jnp.float32)         # BN bias init
    # torch Linear weight layout: (n_class, feature_size)
    w_fc = (jax.random.normal(kfc, (N_CLASS, FEATURE_SIZE), dtype=jnp.float32)
            * (1.0 / jnp.sqrt(FEATURE_SIZE)))

    # One-time parameter prep (padding + bf16 cast + fc pre-transpose).
    wm_p, gb_p, wfc_p, meta = prepare_params(w_model, bn_gamma, bn_beta, w_fc)

    out_padded = icarl_forward(x, wm_p, gb_p, wfc_p, meta)
    out_padded = jax.block_until_ready(out_padded)

    # Test-harness-only slice down to the logical (B, n_class) logits.
    out = out_padded[:B, :N_CLASS]

    # Pure-JAX reference using the same bf16-at-the-MXU / f32-elementwise recipe.
    # TODO(synk): true-f32 PyTorch parity would require f32 matmuls; bf16 MXU
    #             operands shift BN batch statistics within bf16 epsilon.
    x_flat = x.reshape(B, -1)
    feat_ref = jnp.dot(x_flat.astype(jnp.bfloat16),
                       w_model.astype(jnp.bfloat16),
                       preferred_element_type=jnp.float32)
    mean = feat_ref.mean(axis=0, keepdims=True)
    var = ((feat_ref - mean) ** 2).mean(axis=0, keepdims=True)      # biased (train)
    xn = (feat_ref - mean) * jax.lax.rsqrt(var + BN_EPS)
    h_ref = jnp.maximum(bn_gamma * xn + bn_beta, 0.0)
    ref = jnp.dot(h_ref.astype(jnp.bfloat16),
                  w_fc.T.astype(jnp.bfloat16),
                  preferred_element_type=jnp.float32)

    assert out.shape == (B, N_CLASS)
    assert bool(jnp.all(jnp.isfinite(out_padded)))
    # Padded class columns must be exactly zero (zero-padded fc weight).
    assert bool(jnp.all(out_padded[:, N_CLASS:] == 0.0))
    assert jnp.allclose(out, ref, atol=3e-2, rtol=3e-2), "mismatch vs reference"
    print("KERNEL_OK")
</pallas_src>

<mosaic_0001>
module attributes {stable_mosaic.version = 11 : i64} {
  func.func @icarl_kernel(%arg0: memref<16x1024xf32, #tpu.memory_space<vmem>>, %arg1: memref<1024x128xbf16, #tpu.memory_space<vmem>>, %arg2: memref<2x128xf32, #tpu.memory_space<vmem>>, %arg3: memref<128x128xbf16, #tpu.memory_space<vmem>>, %arg4: memref<16x128xf32, #tpu.memory_space<vmem>>) attributes {dimension_semantics = [], scalar_prefetch = 0 : i64, scratch_operands = 0 : i64, tpu.core_type = #tpu.core_type<tc>} {
    %c0 = arith.constant 0 : index
    %c0_0 = arith.constant 0 : index
    %0 = vector.load %arg0[%c0, %c0_0] : memref<16x1024xf32, #tpu.memory_space<vmem>>, vector<16x1024xf32>
    %1 = arith.truncf %0 : vector<16x1024xf32> to vector<16x1024xbf16>
    %c0_1 = arith.constant 0 : index
    %c0_2 = arith.constant 0 : index
    %2 = vector.load %arg1[%c0_1, %c0_2] : memref<1024x128xbf16, #tpu.memory_space<vmem>>, vector<1024x128xbf16>
    %cst = arith.constant dense<0.000000e+00> : vector<16x128xf32>
    %3 = tpu.matmul %1, %2, %cst {dimension_numbers = #tpu.dot_dimension_numbers<[1], [0], [0], [1], [0, 0, 1, 1], [], []>} : vector<16x1024xbf16>, vector<1024x128xbf16>, vector<16x128xf32> -> vector<16x128xf32>
    %cst_3 = arith.constant dense<0.000000e+00> : vector<128xf32>
    %4 = vector.multi_reduction <add>, %3, %cst_3 [0] : vector<16x128xf32> to vector<128xf32>
    %5 = vector.shape_cast %4 : vector<128xf32> to vector<1x128xf32>
    %6 = arith.mulf %3, %3 : vector<16x128xf32>
    %cst_4 = arith.constant dense<0.000000e+00> : vector<128xf32>
    %7 = vector.multi_reduction <add>, %6, %cst_4 [0] : vector<16x128xf32> to vector<128xf32>
    %8 = vector.shape_cast %7 : vector<128xf32> to vector<1x128xf32>
    %cst_5 = arith.constant 6.250000e-02 : f32
    %9 = vector.broadcast %cst_5 : f32 to vector<1x128xf32>
    %10 = arith.mulf %5, %9 : vector<1x128xf32>
    %cst_6 = arith.constant 6.250000e-02 : f32
    %11 = vector.broadcast %cst_6 : f32 to vector<1x128xf32>
    %12 = arith.mulf %8, %11 : vector<1x128xf32>
    %13 = arith.mulf %10, %10 : vector<1x128xf32>
    %14 = arith.subf %12, %13 : vector<1x128xf32>
    %cst_7 = arith.constant 9.99999974E-6 : f32
    %15 = vector.broadcast %cst_7 : f32 to vector<1x128xf32>
    %16 = arith.addf %14, %15 : vector<1x128xf32>
    %17 = math.rsqrt %16 : vector<1x128xf32>
    %c0_8 = arith.constant 0 : index
    %c0_9 = arith.constant 0 : index
    %18 = vector.load %arg2[%c0_8, %c0_9] : memref<2x128xf32, #tpu.memory_space<vmem>>, vector<2x128xf32>
    %19 = vector.extract_strided_slice %18 {offsets = [0, 0], sizes = [1, 128], strides = [1, 1]} : vector<2x128xf32> to vector<1x128xf32>
    %20 = arith.mulf %19, %17 : vector<1x128xf32>
    %21 = vector.extract_strided_slice %18 {offsets = [1, 0], sizes = [1, 128], strides = [1, 1]} : vector<2x128xf32> to vector<1x128xf32>
    %22 = arith.mulf %10, %20 : vector<1x128xf32>
    %23 = arith.subf %21, %22 : vector<1x128xf32>
    %24 = vector.broadcast %20 : vector<1x128xf32> to vector<16x128xf32>
    %25 = arith.mulf %3, %24 : vector<16x128xf32>
    %26 = vector.broadcast %23 : vector<1x128xf32> to vector<16x128xf32>
    %27 = arith.addf %25, %26 : vector<16x128xf32>
    %cst_10 = arith.constant 0.000000e+00 : f32
    %28 = vector.broadcast %cst_10 : f32 to vector<16x128xf32>
    %29 = arith.maximumf %27, %28 : vector<16x128xf32>
    %30 = arith.truncf %29 : vector<16x128xf32> to vector<16x128xbf16>
    %c0_11 = arith.constant 0 : index
    %c0_12 = arith.constant 0 : index
    %31 = vector.load %arg3[%c0_11, %c0_12] : memref<128x128xbf16, #tpu.memory_space<vmem>>, vector<128x128xbf16>
    %cst_13 = arith.constant dense<0.000000e+00> : vector<16x128xf32>
    %32 = tpu.matmul %30, %31, %cst_13 {dimension_numbers = #tpu.dot_dimension_numbers<[1], [0], [0], [1], [0, 0, 1, 1], [], []>} : vector<16x128xbf16>, vector<128x128xbf16>, vector<16x128xf32> -> vector<16x128xf32>
    %c0_14 = arith.constant 0 : index
    %c0_15 = arith.constant 0 : index
    %33 = vector.load %arg4[%c0_14, %c0_15] : memref<16x128xf32, #tpu.memory_space<vmem>>, vector<16x128xf32>
    tpu.vector_store %arg4[%c0_14, %c0_15], %32 {strides = array<i32>} : memref<16x128xf32, #tpu.memory_space<vmem>>, vector<16x128xf32>,
    return
  }
}

</mosaic_0001>

<bundles_post_ra>
// kernel: tpu_custom_call.1
= control target key start
LH: loop header
LB: loop body
LE: loop exit
PB: predicated region body
PF: predicated region fallthrough
CT: control target
= control target key end

     0   :  { %9 = vsyncpa [#allocation3], 0  ;;  %s1340_s0 = inlined_call_operand.hbm [shape: f32[16,1024], index: 0, kind: input, shape index: {}]   ;;  %s1341_s1 = inlined_call_operand.hbm [shape: bf16[1024,128], index: 1, kind: input, shape index: {}]   ;;  %s1342_s2 = inlined_call_operand.vmem [shape: f32[2,128], index: 2, kind: input, shape index: {}]   ;;  %s1343_s3 = inlined_call_operand.hbm [shape: bf16[128,128], index: 3, kind: input, shape index: {}]   ;;  %s1344_s4 = inlined_call_operand.hbm [shape: f32[16,128], index: 4, kind: output, shape index: {}]  }
   0x1   :  { %10 = vsyncpa [#allocation6], 0 }
   0x2   :  { %11 = vsyncpa [#allocation4], 0  ;;  %s1289_s15 = smov [#allocation5]  }
   0x3   :  { %s29_s16 = sshll.u32 %s1289_s15, 4  ;;  %s30_s16 = int_to_ptr.vmem [resolvable:$true] %s29_s16 }
   0x4   :  { %s1211_s17 = scalar_lea.vmem %s30_s16, 8192  ;;  %p1216_p1 = scmp.lt.s32.totalorder %s30_s16, %s30_s16 }
   0x5   :  { %p1212_p0 = scmp.ne.s32.totalorder %s30_s16, %s1211_s17  ;;  %p1217_p2 = scmp.lt.s32.totalorder %s1211_s17, %s1211_s17 }
   0x7   :  { %p1218_p3 = por %p1217_p2, %p1216_p1 }
   0x9   :  { %p1219_p4 = pnand %p1218_p3, %p1212_p0 }
   0xb   :  { %1222 = shalt.err (!%p1219_p4)
}
   0xc   :  { %s1290_s18 = smov 64   ;;  %s1291_s19 = smov 4  }
   0xd   :  { %35 = dma.hbm_to_vmem [thread:$0]  %s1341_s1, 8192, %s30_s16, [#allocation6], %s1290_s18, %s1290_s18, %s1291_s19  }
   0xe   :  { %s1292_s22 = smov [#allocation2]  }
   0xf   :  { %s17_s23 = sshll.u32 %s1292_s22, 4  ;;  %s18_s23 = int_to_ptr.vmem [resolvable:$true] %s17_s23 }
  0x10   :  { %s1231_s24 = scalar_lea.vmem %s18_s23, 2048  ;;  %p1236_p6 = scmp.lt.s32.totalorder %s18_s23, %s18_s23 }
  0x11   :  { %p1232_p5 = scmp.ne.s32.totalorder %s18_s23, %s1231_s24  ;;  %p1237_p7 = scmp.lt.s32.totalorder %s1231_s24, %s1231_s24 }
  0x13   :  { %p1238_p8 = por %p1237_p7, %p1236_p6 }
  0x15   :  { %p1239_p9 = pnand %p1238_p8, %p1232_p5 }
  0x17   :  { %1242 = shalt.err (!%p1239_p9)
}
  0x18   :  { %s1293_s25 = smov 1024   ;;  %s1294_s28 = smov [#allocation7]  }
  0x19   :  { %23 = dma.hbm_to_vmem [thread:$0]  %s1340_s0, 2048, %s18_s23, [#allocation3], %s1293_s25, %s1293_s25, %s1290_s18  }
  0x1a   :  { %s43_s29 = sshll.u32 %s1294_s28, 4  ;;  %s44_s29 = int_to_ptr.vmem [resolvable:$true] %s43_s29 }
  0x1b   :  { %s1251_s30 = scalar_lea.vmem %s44_s29, 1024  ;;  %p1256_p11 = scmp.lt.s32.totalorder %s44_s29, %s44_s29 }
  0x1c   :  { %p1252_p10 = scmp.ne.s32.totalorder %s44_s29, %s1251_s30  ;;  %p1257_p12 = scmp.lt.s32.totalorder %s1251_s30, %s1251_s30 }
  0x1e   :  { %p1258_p13 = por %p1257_p12, %p1256_p11 }
  0x20   :  { %p1259_p0 = pnand %p1258_p13, %p1252_p10 }
  0x22   :  { %1262 = shalt.err (!%p1259_p0)
}
  0x23   :  { %49 = dma.hbm_to_vmem [thread:$0]  %s1343_s3, 1024, %s44_s29, [#allocation6], %s1290_s18, %s1290_s18, %s1291_s19  }
  0x24   :  { %1283 = dma.done.wait [#allocation3], 2048  }
  0x25   :  { %1284 = vsyncadd [#allocation3], 4294965248 }
  0x26   :  { %1285 = dma.done.wait [#allocation6], 9216  }
  0x27   :  { %1286 = vsyncadd [#allocation6], 4294958080  ;;  %v1129_v0 = vld [vmem:[#allocation5 + $0x78] sm:$0xff]   ;;  %v1133_v4 = vld [vmem:[#allocation5 + $0x70] sm:$0xff]   ;;  %vm1296_vm0 = vmmov 0   ;;  %s1297_s6 = smov [#allocation8]  }
  0x28   :  { %v1130_v1 = vld [vmem:[#allocation5 + $0xf8] sm:$0xff]   ;;  %1001 = vmatprep.subr.bf16.mxu0 %v1129_v0  ;;  %v1134_v5 = vld [vmem:[#allocation5 + $0xf0] sm:$0xff]   ;;  %v1137_v8 = vld [vmem:[#allocation5 + $0x68] sm:$0xff]   ;;  %s916_s7 = sshll.u32 %s1297_s6, 4  ;;  %s917_s7 = int_to_ptr.vmem [resolvable:$true] %s916_s7 }
  0x29   :  { %v1131_v2 = vld [vmem:[#allocation5 + $0x38] sm:$0xff]   ;;  %1023 = vmatprep.subr.bf16.mxu1 %v1130_v1  ;;  %v1135_v6 = vld [vmem:[#allocation5 + $0x30] sm:$0xff]   ;;  %v1138_v9 = vld [vmem:[#allocation5 + $0xe8] sm:$0xff]   ;;  %p1268_p2 = scmp.lt.s32.totalorder %s917_s7, %s917_s7 }
  0x2a   :  { %v1132_v3 = vld [vmem:[#allocation5 + $0xb8] sm:$0xff]   ;;  %1002 = vmatpush3.bf16.msra.mxu0 %v1131_v2  ;;  %v1136_v7 = vld [vmem:[#allocation5 + $0xb0] sm:$0xff]   ;;  %v1139_v10 = vld [vmem:[#allocation5 + $0x28] sm:$0xff]  }
  0x2b   :  { %1024 = vmatpush3.bf16.msra.mxu1 %v1132_v3  ;;  %1003 = vmatprep.subr.bf16.mxu0 %v1133_v4  ;;  %v1140_v11 = vld [vmem:[#allocation5 + $0xa8] sm:$0xff]   ;;  %v1141_v12 = vld [vmem:[#allocation5 + $0x60] sm:$0xff]   ;;  %v1145_v16 = vld [vmem:[#allocation5 + $0x58] sm:$0xff]  }
  0x2c   :  { %1025 = vmatprep.subr.bf16.mxu1 %v1134_v5  ;;  %v1142_v13 = vld [vmem:[#allocation5 + $0xe0] sm:$0xff]   ;;  %v1146_v17 = vld [vmem:[#allocation5 + $0xd8] sm:$0xff]   ;;  %v1149_v20 = vld [vmem:[#allocation5 + $0x50] sm:$0xff]  }
  0x2d   :  { %v1143_v14 = vld [vmem:[#allocation5 + $0x20] sm:$0xff]   ;;  %v1147_v18 = vld [vmem:[#allocation5 + $0x18] sm:$0xff]   ;;  %v1150_v21 = vld [vmem:[#allocation5 + $0xd0] sm:$0xff]  }
  0x2e   :  { %1004 = vmatpush3.bf16.msra.mxu0 %v1135_v6  ;;  %v1144_v15 = vld [vmem:[#allocation5 + $0xa0] sm:$0xff]   ;;  %v1148_v19 = vld [vmem:[#allocation5 + $0x98] sm:$0xff]   ;;  %v1151_v22 = vld [vmem:[#allocation5 + $0x10] sm:$0xff]  }
  0x2f   :  { %1026 = vmatpush3.bf16.msra.mxu1 %v1136_v7  ;;  %1005 = vmatprep.subr.bf16.mxu0 %v1137_v8  ;;  %v1152_v23 = vld [vmem:[#allocation5 + $0x90] sm:$0xff]   ;;  %v1153_v24 = vld [vmem:[#allocation5 + $0x48] sm:$0xff]   ;;  %v1157_v28 = vld [vmem:[#allocation5 + $0x40] sm:$0xff]  }
  0x30   :  { %1027 = vmatprep.subr.bf16.mxu1 %v1138_v9  ;;  %v1154_v25 = vld [vmem:[#allocation5 + $0xc8] sm:$0xff]   ;;  %v1158_v29 = vld [vmem:[#allocation5 + $0xc0] sm:$0xff]   ;;  %v63_v34 = vld [vmem:[#allocation2 + $0x18] sm:$0xff] }
  0x31   :  { %v1155_v26 = vld [vmem:[#allocation5 + $0x8] sm:$0xff]   ;;  %v1159_v30 = vld [vmem:[#allocation5] sm:$0xff]   ;;  %v71_v36 = vld [vmem:[#allocation2 + $0x58] sm:$0xff] }
  0x32   :  { %1006 = vmatpush3.bf16.msra.mxu0 %v1139_v10  ;;  %v1156_v27 = vld [vmem:[#allocation5 + $0x88] sm:$0xff]   ;;  %v1160_v31 = vld [vmem:[#allocation5 + $0x80] sm:$0xff]   ;;  %v79_v39 = vpack.c.bf16 %v71_v36, %v63_v34  ;;  %v62_v41 = vld [vmem:[#allocation2 + $0x10] sm:$0xff] }
  0x33   :  { %1028 = vmatpush3.bf16.msra.mxu1 %v1140_v11  ;;  %1007 = vmatprep.subr.bf16.mxu0 %v1141_v12  ;;  %v61_v32 = vld [vmem:[#allocation2 + $0x8] sm:$0xff]  ;;  %v60_v37 = vld [vmem:[#allocation2] sm:$0xff]  ;;  %v70_v42 = vld [vmem:[#allocation2 + $0x50] sm:$0xff] }
  0x34   :  { %1029 = vmatprep.subr.bf16.mxu1 %v1142_v13  ;;  %v69_v33 = vld [vmem:[#allocation2 + $0x48] sm:$0xff]  ;;  %v68_v38 = vld [vmem:[#allocation2 + $0x40] sm:$0xff]  ;;  %v78_v43 = vpack.c.bf16 %v70_v42, %v62_v41  ;;  %v1161_v44 = vld [vmem:[#allocation5 + $0x178] sm:$0xff]   ;;  %669 = vmatprep.mubr.bf16.mxu1 %v79_v39 }
  0x35   :  { %v77_v35 = vpack.c.bf16 %v69_v33, %v61_v32  ;;  %v76_v40 = vpack.c.bf16 %v68_v38, %v60_v37  ;;  %v1162_v45 = vld [vmem:[#allocation5 + $0x1f8] sm:$0xff]   ;;  %v1165_v48 = vld [vmem:[#allocation5 + $0x170] sm:$0xff]   ;;  %v1169_v52 = vld [vmem:[#allocation5 + $0x168] sm:$0xff]  }
  0x36   :  { %1008 = vmatpush3.bf16.msra.mxu0 %v1143_v14  ;;  %v1163_v46 = vld [vmem:[#allocation5 + $0x138] sm:$0xff]   ;;  %v1166_v49 = vld [vmem:[#allocation5 + $0x1f0] sm:$0xff]   ;;  %v1170_v53 = vld [vmem:[#allocation5 + $0x1e8] sm:$0xff]  }
  0x37   :  { %1030 = vmatpush3.bf16.msra.mxu1 %v1144_v15  ;;  %1009 = vmatprep.subr.bf16.mxu0 %v1145_v16  ;;  %v1164_v47 = vld [vmem:[#allocation5 + $0x1b8] sm:$0xff]   ;;  %v1167_v50 = vld [vmem:[#allocation5 + $0x130] sm:$0xff]   ;;  %v1171_v54 = vld [vmem:[#allocation5 + $0x128] sm:$0xff]  }
  0x38   :  { %1031 = vmatprep.subr.bf16.mxu1 %v1146_v17  ;;  %628 = vmatprep.mubr.bf16.mxu0 %v77_v35  ;;  %v1168_v51 = vld [vmem:[#allocation5 + $0x1b0] sm:$0xff]   ;;  %v1172_v55 = vld [vmem:[#allocation5 + $0x1a8] sm:$0xff]   ;;  %v1173_v56 = vld [vmem:[#allocation5 + $0x160] sm:$0xff]  }
  0x39   :  { %v1174_v57 = vld [vmem:[#allocation5 + $0x1e0] sm:$0xff]   ;;  %v1177_v60 = vld [vmem:[#allocation5 + $0x158] sm:$0xff]   ;;  %v1181_v0 = vld [vmem:[#allocation5 + $0x150] sm:$0xff]  }
  0x3a   :  { %1010 = vmatpush3.bf16.msra.mxu0 %v1147_v18  ;;  %v1175_v58 = vld [vmem:[#allocation5 + $0x120] sm:$0xff]   ;;  %v1178_v61 = vld [vmem:[#allocation5 + $0x1d8] sm:$0xff]   ;;  %v1182_v1 = vld [vmem:[#allocation5 + $0x1d0] sm:$0xff]  }
  0x3b   :  { %1032 = vmatpush3.bf16.msra.mxu1 %v1148_v19  ;;  %1011 = vmatprep.subr.bf16.mxu0 %v1149_v20  ;;  %v1176_v59 = vld [vmem:[#allocation5 + $0x1a0] sm:$0xff]   ;;  %v1179_v62 = vld [vmem:[#allocation5 + $0x118] sm:$0xff]   ;;  %v1183_v2 = vld [vmem:[#allocation5 + $0x110] sm:$0xff]  }
  0x3c   :  { %1033 = vmatprep.subr.bf16.mxu1 %v1150_v21  ;;  %v1180_v63 = vld [vmem:[#allocation5 + $0x198] sm:$0xff]   ;;  %v1184_v3 = vld [vmem:[#allocation5 + $0x190] sm:$0xff]   ;;  %v1185_v4 = vld [vmem:[#allocation5 + $0x148] sm:$0xff]  }
  0x3d   :  { %v1186_v5 = vld [vmem:[#allocation5 + $0x1c8] sm:$0xff]   ;;  %v1189_v8 = vld [vmem:[#allocation5 + $0x140] sm:$0xff]   ;;  %v67_v14 = vld [vmem:[#allocation2 + $0x38] sm:$0xff] }
  0x3e   :  { %1012 = vmatpush3.bf16.msra.mxu0 %v1151_v22  ;;  %v1187_v6 = vld [vmem:[#allocation5 + $0x108] sm:$0xff]   ;;  %v1190_v9 = vld [vmem:[#allocation5 + $0x1c0] sm:$0xff]   ;;  %v75_v15 = vld [vmem:[#allocation2 + $0x78] sm:$0xff] }
  0x3f   :  { %1034 = vmatpush3.bf16.msra.mxu1 %v1152_v23  ;;  %1013 = vmatprep.subr.bf16.mxu0 %v1153_v24  ;;  %v1188_v7 = vld [vmem:[#allocation5 + $0x188] sm:$0xff]   ;;  %v1191_v10 = vld [vmem:[#allocation5 + $0x100] sm:$0xff]   ;;  %v83_v17 = vpack.c.bf16 %v75_v15, %v67_v14  ;;  %v66_v20 = vld [vmem:[#allocation2 + $0x30] sm:$0xff] }
  0x40   :  { %1035 = vmatprep.subr.bf16.mxu1 %v1154_v25  ;;  %v1192_v11 = vld [vmem:[#allocation5 + $0x180] sm:$0xff]   ;;  %v65_v12 = vld [vmem:[#allocation2 + $0x28] sm:$0xff]  ;;  %v74_v22 = vld [vmem:[#allocation2 + $0x70] sm:$0xff]  ;;  %v1295_v25 = vmov 0.0  }
  0x41   :  { %v73_v13 = vld [vmem:[#allocation2 + $0x68] sm:$0xff]  ;;  %v64_v18 = vld [vmem:[#allocation2 + $0x20] sm:$0xff]  ;;  %v82_v23 = vpack.c.bf16 %v74_v22, %v66_v20  ;;  %v1193_v24 = vld [vmem:[#allocation7 + $0x38] sm:$0xff]   ;;  %v789_v20 = vlaneseq }
  0x42   :  { %1014 = vmatpush3.bf16.msra.mxu0 %v1155_v26  ;;  %v81_v16 = vpack.c.bf16 %v73_v13, %v65_v12  ;;  %v72_v19 = vld [vmem:[#allocation2 + $0x60] sm:$0xff]  ;;  %v1194_v26 = vld [vmem:[#allocation7 + $0x30] sm:$0xff]  }
  0x43   :  { %1036 = vmatpush3.bf16.msra.mxu1 %v1156_v27  ;;  %1015 = vmatprep.subr.bf16.mxu0 %v1157_v28  ;;  %v80_v21 = vpack.c.bf16 %v72_v19, %v64_v18  ;;  %v1195_v27 = vld [vmem:[#allocation7 + $0x28] sm:$0xff]   ;;  %v1196_v28 = vld [vmem:[#allocation7 + $0x20] sm:$0xff]  }
  0x44   :  { %1037 = vmatprep.subr.bf16.mxu1 %v1158_v29  ;;  %v1197_v29 = vld [vmem:[#allocation7 + $0x18] sm:$0xff]   ;;  %v1200_v32 = vld [vmem:[#allocation7] sm:$0xff]  }
  0x45   :  { %v782_v22 = vld [vmem:[%s1342_s2] sm:$0x3]  ;;  %s1263_s2 = scalar_lea.vmem %s917_s7, 256 }
  0x46   :  { %1016 = vmatpush3.bf16.msra.mxu0 %v1159_v30  ;;  %v1198_v30 = vld [vmem:[#allocation7 + $0x10] sm:$0xff]   ;;  %p1264_p1 = scmp.ne.s32.totalorder %s917_s7, %s1263_s2  ;;  %p1269_p3 = scmp.lt.s32.totalorder %s1263_s2, %s1263_s2 }
  0x47   :  { %1038 = vmatpush3.bf16.msra.mxu1 %v1160_v31  ;;  %1045 = vmatprep.subr.bf16.mxu0 %v1161_v44  ;;  %v1199_v31 = vld [vmem:[#allocation7 + $0x8] sm:$0xff]  }
  0x48   :  { %1067 = vmatprep.subr.bf16.mxu1 %v1162_v45  ;;  %p1270_p4 = por %p1269_p3, %p1268_p2 }
  0x49   :  { %629 = vmatmul.mubr.bf16.vlgmr.msra.gmra.mxu0 %v76_v40 }
  0x4a   :  { %670 = vmatmul.mubr.bf16.vlgmr.msra.gmra.mxu1 %v78_v43  ;;  %1046 = vmatpush3.bf16.msra.mxu0 %v1163_v46  ;;  %p1271_p5 = pnand %p1270_p4, %p1264_p1 }
  0x4b   :  { %1068 = vmatpush3.bf16.msra.mxu1 %v1164_v47  ;;  %1047 = vmatprep.subr.bf16.mxu0 %v1165_v48 }
  0x4c   :  { %1069 = vmatprep.subr.bf16.mxu1 %v1166_v49  ;;  %710 = vmatprep.mubr.bf16.mxu0 %v81_v16 }
  0x4d   :  { %751 = vmatprep.mubr.bf16.mxu1 %v83_v17 }
  0x4e   :  { %1048 = vmatpush3.bf16.msra.mxu0 %v1167_v50 }
  0x4f   :  { %1070 = vmatpush3.bf16.msra.mxu1 %v1168_v51  ;;  %1049 = vmatprep.subr.bf16.mxu0 %v1169_v52 }
  0x50   :  { %1071 = vmatprep.subr.bf16.mxu1 %v1170_v53 }
  0x52   :  { %1050 = vmatpush3.bf16.msra.mxu0 %v1171_v54 }
  0x53   :  { %1072 = vmatpush3.bf16.msra.mxu1 %v1172_v55  ;;  %1051 = vmatprep.subr.bf16.mxu0 %v1173_v56 }
  0x54   :  { %1073 = vmatprep.subr.bf16.mxu1 %v1174_v57 }
  0x56   :  { %1052 = vmatpush3.bf16.msra.mxu0 %v1175_v58 }
  0x57   :  { %1074 = vmatpush3.bf16.msra.mxu1 %v1176_v59  ;;  %1053 = vmatprep.subr.bf16.mxu0 %v1177_v60 }
  0x58   :  { %1075 = vmatprep.subr.bf16.mxu1 %v1178_v61 }
  0x5a   :  { %1054 = vmatpush3.bf16.msra.mxu0 %v1179_v62 }
  0x5b   :  { %1076 = vmatpush3.bf16.msra.mxu1 %v1180_v63  ;;  %1055 = vmatprep.subr.bf16.mxu0 %v1181_v0 }
  0x5c   :  { %1077 = vmatprep.subr.bf16.mxu1 %v1182_v1 }
  0x5e   :  { %1056 = vmatpush3.bf16.msra.mxu0 %v1183_v2 }
  0x5f   :  { %1078 = vmatpush3.bf16.msra.mxu1 %v1184_v3  ;;  %1057 = vmatprep.subr.bf16.mxu0 %v1185_v4 }
  0x60   :  { %1079 = vmatprep.subr.bf16.mxu1 %v1186_v5 }
  0x62   :  { %1058 = vmatpush3.bf16.msra.mxu0 %v1187_v6 }
  0x63   :  { %1080 = vmatpush3.bf16.msra.mxu1 %v1188_v7  ;;  %1059 = vmatprep.subr.bf16.mxu0 %v1189_v8 }
  0x64   :  { %1081 = vmatprep.subr.bf16.mxu1 %v1190_v9 }
  0x66   :  { %1060 = vmatpush3.bf16.msra.mxu0 %v1191_v10 }
  0x67   :  { %1082 = vmatpush3.bf16.msra.mxu1 %v1192_v11  ;;  %1098 = vmatprep.subr.bf16.mxu0 %v1295_v25 }
  0x69   :  { %711 = vmatmul.mubr.bf16.vlgmr.msra.gmra.mxu0 %v80_v21  ;;  %v790_v21 = vshrl.u32 %v789_v20, 7 }
  0x6a   :  { %752 = vmatmul.mubr.bf16.vlgmr.msra.gmra.mxu1 %v82_v23  ;;  %1099 = vmatpush3.bf16.msra.mxu0 %v1193_v24 }
  0x6b   :  { %1100 = vmatprep.subr.bf16.mxu0 %v1295_v25  ;;  %1114 = vmatprep.mubr.msk.bf16.mxu0 %vm1296_vm0, %v1295_v25 }
  0x6e   :  { %1101 = vmatpush3.bf16.msra.mxu0 %v1194_v26 }
  0x6f   :  { %1102 = vmatprep.subr.bf16.mxu0 %v1295_v25 }
  0x72   :  { %1103 = vmatpush3.bf16.msra.mxu0 %v1195_v27 }
  0x73   :  { %1104 = vmatprep.subr.bf16.mxu0 %v1295_v25 }
  0x76   :  { %1105 = vmatpush3.bf16.msra.mxu0 %v1196_v28 }
  0x77   :  { %1106 = vmatprep.subr.bf16.mxu0 %v1295_v25 }
  0x7a   :  { %1107 = vmatpush3.bf16.msra.mxu0 %v1197_v29  ;;  %v797_v29 = vsub.s32 1, %v790_v21 }
  0x7b   :  { %1108 = vmatprep.subr.bf16.mxu0 %v1295_v25 }
  0x7e   :  { %1109 = vmatpush3.bf16.msra.mxu0 %v1198_v30 }
  0x7f   :  { %1110 = vmatprep.subr.bf16.mxu0 %v1295_v25 }
  0x82   :  { %1111 = vmatpush3.bf16.msra.mxu0 %v1199_v31 }
  0x83   :  { %1112 = vmatprep.subr.bf16.mxu0 %v1295_v25  ;;  %v791_v25 = vsub.s32 0, %v790_v21 }
  0x86   :  { %1113 = vmatpush3.bf16.msra.mxu0 %v1200_v32 }
 0x109   :  { %v1017_v33 = vpop.f32.mrf.mxu0 }
 0x10a   :  { %v1039_v34 = vpop.f32.mrf.mxu1 }
 0x10b   :  { %v1018_v35 = vpop.f32.mrf.mxu0 }
 0x10c   :  { %v1040_v36 = vpop.f32.mrf.mxu1  ;;  %v1019_v40 = vadd.f32 %v1018_v35, %v1017_v33 }
 0x10d   :  { %v1020_v37 = vpop.f32.mrf.mxu0  ;;  %v1041_v41 = vadd.f32 %v1040_v36, %v1039_v34 }
 0x10e   :  { %v1042_v38 = vpop.f32.mrf.mxu1 }
 0x10f   :  { %v1021_v39 = vpop.f32.mrf.mxu0  ;;  %v672_v46 = vadd.f32 %v1041_v41, %v1019_v40 }
 0x110   :  { %v1043_v42 = vpop.f32.mrf.mxu1  ;;  %v1022_v47 = vadd.f32 %v1021_v39, %v1020_v37 }
 0x111   :  { %v1044_v48 = vadd.f32 %v1043_v42, %v1042_v38 }
 0x113   :  { %v675_v55 = vadd.f32 %v1044_v48, %v1022_v47 }
 0x129   :  { %v1061_v43 = vpop.f32.mrf.mxu0 }
 0x12a   :  { %v1083_v44 = vpop.f32.mrf.mxu1 }
 0x12b   :  { %v1062_v45 = vpop.f32.mrf.mxu0 }
 0x12c   :  { %v1063_v49 = vadd.f32 %v1062_v45, %v1061_v43  ;;  %v1084_v50 = vpop.f32.mrf.mxu1 }
 0x12d   :  { %v1064_v51 = vpop.f32.mrf.mxu0  ;;  %v1085_v56 = vadd.f32 %v1084_v50, %v1083_v44 }
 0x12e   :  { %v713_v52 = vadd.f32 %v1063_v49, %v672_v46  ;;  %v1086_v53 = vpop.f32.mrf.mxu1 }
 0x12f   :  { %v1065_v54 = vpop.f32.mrf.mxu0 }
 0x130   :  { %v1066_v57 = vadd.f32 %v1065_v54, %v1064_v51  ;;  %v1087_v58 = vpop.f32.mrf.mxu1  ;;  %v754_v59 = vadd.f32 %v1085_v56, %v713_v52 }
 0x131   :  { %v1088_v61 = vadd.f32 %v1087_v58, %v1086_v53 }
 0x132   :  { %v716_v60 = vadd.f32 %v1066_v57, %v675_v55  ;;  %v767_v63 = vmul.f32 %v754_v59, %v754_v59 }
 0x134   :  { %v757_v62 = vadd.f32 %v1088_v61, %v716_v60 }
 0x136   :  { %v760_v0 = vadd.f32 %v757_v62, %v754_v59  ;;  %v768_v1 = vmul.f32 %v757_v62, %v757_v62 }
 0x138   :  { %v761_v2 = vrot.slane %v760_v0, 4  ;;  %v769_v3 = vadd.f32 %v768_v1, %v767_v63 }
 0x13a   :  { %v762_v4 = vadd.f32 %v761_v2, %v760_v0  ;;  %v770_v5 = vrot.slane %v769_v3, 4 }
 0x13c   :  { %v763_v6 = vrot.slane %v762_v4, 2  ;;  %v771_v7 = vadd.f32 %v770_v5, %v769_v3 }
 0x13e   :  { %v764_v8 = vadd.f32 %v763_v6, %v762_v4  ;;  %v772_v9 = vrot.slane %v771_v7, 2 }
 0x140   :  { %v765_v10 = vrot.slane %v764_v8, 1  ;;  %v773_v11 = vadd.f32 %v772_v9, %v771_v7 }
 0x142   :  { %v766_v12 = vadd.f32 %v765_v10, %v764_v8  ;;  %v774_v13 = vrot.slane %v773_v11, 1 }
 0x144   :  { %v775_v14 = vadd.f32 %v774_v13, %v773_v11  ;;  %v776_v15 = vmul.f32 0.0625, %v766_v12 }
 0x146   :  { %v777_v16 = vmul.f32 0.0625, %v775_v14  ;;  %v778_v17 = vmul.f32 %v776_v15, %v776_v15 }
 0x148   :  { %v779_v18 = vsub.f32 %v777_v16, %v778_v17 }
 0x14a   :  { %v780_v19 = vadd.f32 1e-05, %v779_v18 }
 0x14c   :  { %1201 = vrsqrt.f32 %v780_v19 }
 0x159   :  { %v1202_v23 = vpop.eup %1201 }
 0x15a   :  { %v783_v24 = vmul.f32 %v1202_v23, %v782_v22 }
 0x15c   :  { %v784_v26 = vmul.f32 %v783_v24, %v776_v15  ;;  %v792_v28 = vrot.slane %v783_v24, %v791_v25 }
 0x15e   :  { %v786_v27 = vrot.slane %v784_v26, 7  ;;  %v793_v31 = vmul.f32 %v792_v28, %v754_v59  ;;  %v794_v32 = vmul.f32 %v792_v28, %v757_v62 }
 0x160   :  { %v788_v30 = vsub.f32 %v782_v22, %v786_v27 }
 0x162   :  { %v798_v33 = vrot.slane %v788_v30, %v797_v29 }
 0x164   :  { %v800_v34 = vadd.f32 %v798_v33, %v794_v32  ;;  %v799_v35 = vadd.f32 %v798_v33, %v793_v31 }
 0x166   :  { %v801_v36 = vmax.f32 %v799_v35, 0.0  ;;  %v802_v37 = vmax.f32 %v800_v34, 0.0 }
 0x168   :  { %v803_v38 = vpack.c.bf16 %v802_v37, %v801_v36 }
 0x16a   :  { %1115 = vmatmul.mubr.bf16.vlgmr.msra.gmra.mxu0 %v803_v38 }
 0x22a   :  { %v902_v39 = vpop.f32.mrf.mxu0 }
 0x22b   :  { %909 = vst [vmem:[#allocation8] sm:$0xff] %v902_v39 }
 0x22c   :  { %v1116_v40 = vpop.f32.mrf.mxu0 }
 0x22e   :  { %v905_v41 = vpop.f32.mrf.mxu0 }
 0x22f   :  { %910 = vst [vmem:[#allocation8 + $0x8] sm:$0xff] %v905_v41 }
 0x230   :  { %v1117_v42 = vpop.f32.mrf.mxu0 }
 0x231   :  { %1274 = shalt.err (!%p1271_p5)
}
 0x232   :  { %s1298_s8 = smov 128   ;;  %s1299_s9 = smov 8  }
 0x233   :  { %922 = dma.vmem_to_hbm [thread:$0]  %s917_s7, 256, %s1344_s4, [#allocation4], %s1298_s8, %s1298_s8, %s1299_s9  }
 0x234   :  { %1287 = dma.done.wait [#allocation4], 256  }
 0x235   :  { %1288 = vsyncadd [#allocation4], 4294967040 }
 0x236   :  { %926 = vsyncpa [#allocation3], 1 }
 0x237   :  { %927 = vsyncpa [#allocation6], 1 }
 0x238   :  { %928 = vsyncpa [#allocation4], 1 }

</bundles_post_ra>
